<compile_context>
chip_gen: v6e
topology: v6e:2x2x1
jax: 0.10.0
libtpu: 0.0.40
codegen_flags: <defaults>
</compile_context>

<pallas_src>
import functools

import jax
import jax.numpy as jnp
from jax.experimental import pallas as pl
from jax.experimental.pallas import tpu as pltpu


# ---------------------------------------------------------------------------
# Phase 1: per-batch channel sums of (x1 + x2), tiled over HW.
# ---------------------------------------------------------------------------
def _pool_kernel(x1_ref, x2_ref, sum_ref, acc_ref):
    h = pl.program_id(1)

    @pl.when(h == 0)
    def _():
        acc_ref[...] = jnp.zeros_like(acc_ref)

    x1 = x1_ref[0].astype(jnp.float32)            # (C, THW)
    x2 = x2_ref[0].astype(jnp.float32)            # (C, THW)
    # sum each operand separately -> no full-tile (x1 + x2) temporary
    acc_ref[...] += (jnp.sum(x1, axis=-1, keepdims=True) +
                     jnp.sum(x2, axis=-1, keepdims=True))    # (C, 1)

    @pl.when(h == pl.num_programs(1) - 1)
    def _():
        sum_ref[0] = acc_ref[...]


# ---------------------------------------------------------------------------
# Phase 2: weighted fuse + final 1x1 conv, tiled over HW.
# ---------------------------------------------------------------------------
def _fuse_kernel(g_ref, x1_ref, x2_ref, wc_ref, bc_ref, o_ref, *, compute_dtype):
    g = g_ref[...]                                 # (1, 2, C, 1) f32
    g1 = g[0, 0]                                   # (C, 1)
    g2 = g[0, 1]                                   # (C, 1)
    x1 = x1_ref[0].astype(jnp.float32)             # (C, THW)
    x2 = x2_ref[0].astype(jnp.float32)             # (C, THW)
    y = g1 * x1 + g2 * x2                          # (C, THW), gates broadcast on lanes
    out = jnp.dot(wc_ref[...].astype(compute_dtype),
                  y.astype(compute_dtype),
                  preferred_element_type=jnp.float32)        # (C, THW)
    out = out + bc_ref[...]                        # bias (C, 1) broadcast on lanes
    o_ref[0] = out.astype(o_ref.dtype)


def _pick_hw_tile(hw, max_tile):
    """Largest lane-aligned tile (multiple of 128, <= max_tile) dividing hw."""
    for t in range(min(max_tile, hw), 127, -128):
        if t % 128 == 0 and hw % t == 0:
            return t
    return hw  # fall back to the full spatial extent (always a legal block)


def aff_forward(x1_nchw, x2_nchw, params, *, max_tile_hw=1024,
                compute_dtype=jnp.float32):
    """x1, x2: (B, C, H, W) float32.  Returns (B, C, H, W)."""
    w1, b1, wa, ba, wb, bb, wc, bc = params
    B, C, H, W = x1_nchw.shape
    HW = H * W
    THW = _pick_hw_tile(HW, max_tile_hw)
    n_hw = HW // THW

    # contiguous reshape only -- no NCHW<->NHWC transposes, no extra HBM pass
    x1 = x1_nchw.reshape(B, C, HW)
    x2 = x2_nchw.reshape(B, C, HW)

    # ---- phase 1: pooled channel sums (Pallas, cross-tile reduction) ----
    sums = pl.pallas_call(
        _pool_kernel,
        out_shape=jax.ShapeDtypeStruct((B, C, 1), jnp.float32),
        grid_spec=pltpu.PrefetchScalarGridSpec(
            num_scalar_prefetch=0,
            grid=(B, n_hw),                          # reduction axis last
            in_specs=[
                pl.BlockSpec((1, C, THW), lambda b, h: (b, 0, h)),
                pl.BlockSpec((1, C, THW), lambda b, h: (b, 0, h)),
            ],
            out_specs=pl.BlockSpec((1, C, 1), lambda b, h: (b, 0, 0)),
            scratch_shapes=[pltpu.VMEM((C, 1), jnp.float32)],
        ),
        compiler_params=pltpu.CompilerParams(
            dimension_semantics=("parallel", "arbitrary")),
    )(x1, x2)

    # ---- tiny gate math in plain JAX ((B, C) / (B, C//r) sized) ----
    pooled = sums[:, :, 0] * (1.0 / HW)                          # (B, C)
    z = jax.nn.relu(pooled @ w1.T + b1)                          # (B, C//r)
    a1 = z @ wa.T + ba                                           # (B, C)
    a2 = z @ wb.T + bb                                           # (B, C)
    g = jax.nn.softmax(jnp.stack([a1, a2], axis=1), axis=1)      # (B, 2, C)
    g = g[..., None].astype(jnp.float32)                         # (B, 2, C, 1)

    # ---- phase 2: fuse + 1x1 conv (Pallas, grid over (B, HW tiles)) ----
    bc_col = bc.reshape(C, 1).astype(jnp.float32)
    wc_in = wc.astype(compute_dtype)                  # bf16 halves weight DMA on v6e/v7x
    kern = functools.partial(_fuse_kernel, compute_dtype=compute_dtype)

    out = pl.pallas_call(
        kern,
        out_shape=jax.ShapeDtypeStruct((B, C, HW), x1.dtype),
        grid_spec=pltpu.PrefetchScalarGridSpec(
            num_scalar_prefetch=0,
            grid=(B, n_hw),
            in_specs=[
                pl.BlockSpec((1, 2, C, 1), lambda b, h: (b, 0, 0, 0)),  # gates
                pl.BlockSpec((1, C, THW), lambda b, h: (b, 0, h)),      # x1
                pl.BlockSpec((1, C, THW), lambda b, h: (b, 0, h)),      # x2
                pl.BlockSpec((C, C), lambda b, h: (0, 0)),              # wc (fetched once)
                pl.BlockSpec((C, 1), lambda b, h: (0, 0)),              # bc
            ],
            out_specs=pl.BlockSpec((1, C, THW), lambda b, h: (b, 0, h)),
        ),
        compiler_params=pltpu.CompilerParams(
            dimension_semantics=("parallel", "parallel")),
    )(g, x1, x2, wc_in, bc_col)

    return out.reshape(B, C, H, W)


# ---------------------------------------------------------------------------
# Pure-JAX reference (NCHW, conv-convention (out, in) weights) for validation.
# ---------------------------------------------------------------------------
def aff_reference(x1, x2, params):
    w1, b1, wa, ba, wb, bb, wc, bc = params
    pooled = jnp.mean(x1 + x2, axis=(2, 3))                      # (B, C)
    z = jax.nn.relu(pooled @ w1.T + b1)                          # (B, C//r)
    a1 = z @ wa.T + ba
    a2 = z @ wb.T + bb
    g = jax.nn.softmax(jnp.stack([a1, a2], axis=1), axis=1)      # (B, 2, C)
    y = g[:, 0, :, None, None] * x1 + g[:, 1, :, None, None] * x2
    out = jnp.einsum('oc,bchw->bohw', wc, y) + bc[None, :, None, None]
    return out


def init_params(key, channel, reduction):
    """Deterministic synthetic weights; 1x1 convs stored as (out, in) matrices."""
    cr = channel // reduction
    ks = jax.random.split(key, 8)
    scale = lambda fan_in: 1.0 / jnp.sqrt(fan_in)
    w1 = jax.random.normal(ks[0], (cr, channel), jnp.float32) * scale(channel)
    b1 = jax.random.normal(ks[1], (cr,), jnp.float32) * 0.01
    wa = jax.random.normal(ks[2], (channel, cr), jnp.float32) * scale(cr)
    ba = jax.random.normal(ks[3], (channel,), jnp.float32) * 0.01
    wb = jax.random.normal(ks[4], (channel, cr), jnp.float32) * scale(cr)
    bb = jax.random.normal(ks[5], (channel,), jnp.float32) * 0.01
    wc = jax.random.normal(ks[6], (channel, channel), jnp.float32) * scale(channel)
    bc = jax.random.normal(ks[7], (channel,), jnp.float32) * 0.01
    return (w1, b1, wa, ba, wb, bb, wc, bc)


if __name__ == "__main__":
    B, C, H, W = 2, 32, 16, 16          # channel=32, reduction=16 -> C//r = 2
    reduction = 16

    key = jax.random.PRNGKey(0)
    k_x1, k_x2, k_p = jax.random.split(key, 3)
    x1 = jax.random.normal(k_x1, (B, C, H, W), jnp.float32)
    x2 = jax.random.normal(k_x2, (B, C, H, W), jnp.float32)
    params = init_params(k_p, C, reduction)

    ref = aff_reference(x1, x2, params)

    # f32 path; max_tile_hw=128 forces 2 HW tiles so the cross-tile pooled
    # reduction and the tiled fuse/conv are actually exercised.
    out = aff_forward(x1, x2, params, max_tile_hw=128)
    out = jax.block_until_ready(out)
    assert out.shape == (B, C, H, W)
    assert jnp.allclose(out, ref, rtol=1e-4, atol=1e-4), "f32 mismatch vs reference"

    # bf16 MXU path (v6e/v7x recommendation): same kernel, bf16 matmul operands,
    # f32 accumulation -> looser tolerance vs the f32 reference.
    out_bf16 = aff_forward(x1, x2, params, max_tile_hw=128,
                           compute_dtype=jnp.bfloat16)
    out_bf16 = jax.block_until_ready(out_bf16)
    assert jnp.allclose(out_bf16, ref, rtol=5e-2, atol=5e-2), "bf16 mismatch vs reference"

    print("KERNEL_OK")
</pallas_src>

<mosaic_0001>
module attributes {stable_mosaic.version = 11 : i64} {
  func.func @_pool_kernel(%arg0: i32, %arg1: i32, %arg2: memref<1x32x128xf32, #tpu.memory_space<vmem>>, %arg3: memref<1x32x128xf32, #tpu.memory_space<vmem>>, %arg4: memref<1x32x1xf32, #tpu.memory_space<vmem>>, %arg5: memref<32x1xf32, #tpu.memory_space<vmem>>) attributes {dimension_semantics = [#tpu.dimension_semantics<parallel>, #tpu.dimension_semantics<arbitrary>], iteration_bounds = array<i64: 2, 2>, scalar_prefetch = 0 : i64, scratch_operands = 1 : i64, tpu.core_type = #tpu.core_type<tc>, window_params = [{transform_indices = @transform_0, window_bounds = array<i64: 1, 32, 128>}, {transform_indices = @transform_1, window_bounds = array<i64: 1, 32, 128>}, {transform_indices = @transform_2, window_bounds = array<i64: 1, 32, 1>}]} {
    %c0_i32 = arith.constant 0 : i32
    %0 = arith.cmpi eq, %arg1, %c0_i32 : i32
    %1 = arith.extui %0 : i1 to i32
    %c0_i32_0 = arith.constant 0 : i32
    %2 = arith.cmpi ne, %1, %c0_i32_0 : i32
    scf.if %2 {
      %cst_12 = arith.constant 0.000000e+00 : f32
      %18 = vector.broadcast %cst_12 : f32 to vector<32x1xf32>
      %c0_13 = arith.constant 0 : index
      %c0_14 = arith.constant 0 : index
      %19 = vector.load %arg5[%c0_13, %c0_14] : memref<32x1xf32, #tpu.memory_space<vmem>>, vector<32x1xf32>
      tpu.vector_store %arg5[%c0_13, %c0_14], %18 {strides = array<i32>} : memref<32x1xf32, #tpu.memory_space<vmem>>, vector<32x1xf32>,
    } else {
    }
    %c0 = arith.constant 0 : index
    %c0_1 = arith.constant 0 : index
    %c0_2 = arith.constant 0 : index
    %3 = vector.load %arg2[%c0, %c0_1, %c0_2] : memref<1x32x128xf32, #tpu.memory_space<vmem>>, vector<1x32x128xf32>
    %4 = vector.shape_cast %3 : vector<1x32x128xf32> to vector<32x128xf32>
    %c0_3 = arith.constant 0 : index
    %c0_4 = arith.constant 0 : index
    %c0_5 = arith.constant 0 : index
    %5 = vector.load %arg3[%c0_3, %c0_4, %c0_5] : memref<1x32x128xf32, #tpu.memory_space<vmem>>, vector<1x32x128xf32>
    %6 = vector.shape_cast %5 : vector<1x32x128xf32> to vector<32x128xf32>
    %c0_6 = arith.constant 0 : index
    %c0_7 = arith.constant 0 : index
    %7 = vector.load %arg5[%c0_6, %c0_7] : memref<32x1xf32, #tpu.memory_space<vmem>>, vector<32x1xf32>
    %cst = arith.constant dense<0.000000e+00> : vector<32xf32>
    %8 = vector.multi_reduction <add>, %4, %cst [1] : vector<32x128xf32> to vector<32xf32>
    %9 = vector.shape_cast %8 : vector<32xf32> to vector<32x1xf32>
    %cst_8 = arith.constant dense<0.000000e+00> : vector<32xf32>
    %10 = vector.multi_reduction <add>, %6, %cst_8 [1] : vector<32x128xf32> to vector<32xf32>
    %11 = vector.shape_cast %10 : vector<32xf32> to vector<32x1xf32>
    %12 = arith.addf %9, %11 : vector<32x1xf32>
    %13 = arith.addf %7, %12 : vector<32x1xf32>
    %c0_9 = arith.constant 0 : index
    %c0_10 = arith.constant 0 : index
    %14 = vector.load %arg5[%c0_9, %c0_10] : memref<32x1xf32, #tpu.memory_space<vmem>>, vector<32x1xf32>
    tpu.vector_store %arg5[%c0_9, %c0_10], %13 {strides = array<i32>} : memref<32x1xf32, #tpu.memory_space<vmem>>, vector<32x1xf32>,
    %c1_i32 = arith.constant 1 : i32
    %15 = arith.cmpi eq, %arg1, %c1_i32 : i32
    %16 = arith.extui %15 : i1 to i32
    %c0_i32_11 = arith.constant 0 : i32
    %17 = arith.cmpi ne, %16, %c0_i32_11 : i32
    scf.if %17 {
      %c0_12 = arith.constant 0 : index
      %c0_13 = arith.constant 0 : index
      %18 = vector.load %arg5[%c0_12, %c0_13] : memref<32x1xf32, #tpu.memory_space<vmem>>, vector<32x1xf32>
      %c0_14 = arith.constant 0 : index
      %c0_15 = arith.constant 0 : index
      %c0_16 = arith.constant 0 : index
      %19 = vector.load %arg4[%c0_14, %c0_15, %c0_16] : memref<1x32x1xf32, #tpu.memory_space<vmem>>, vector<1x32x1xf32>
      %20 = vector.shape_cast %19 : vector<1x32x1xf32> to vector<32x1xf32>
      %21 = vector.shape_cast %18 : vector<32x1xf32> to vector<1x32x1xf32>
      tpu.vector_store %arg4[%c0_14, %c0_15, %c0_16], %21 {strides = array<i32>} : memref<1x32x1xf32, #tpu.memory_space<vmem>>, vector<1x32x1xf32>,
    } else {
    }
    return
  }
  func.func @transform_0(%arg0: i32, %arg1: i32) -> (i32, i32, i32) {
    %c0_i32 = arith.constant 0 : i32
    %c0_i32_0 = arith.constant 0 : i32
    return %arg0, %c0_i32, %arg1 : i32, i32, i32
  }
  func.func @transform_1(%arg0: i32, %arg1: i32) -> (i32, i32, i32) {
    %c0_i32 = arith.constant 0 : i32
    %c0_i32_0 = arith.constant 0 : i32
    return %arg0, %c0_i32, %arg1 : i32, i32, i32
  }
  func.func @transform_2(%arg0: i32, %arg1: i32) -> (i32, i32, i32) {
    %c0_i32 = arith.constant 0 : i32
    %c0_i32_0 = arith.constant 0 : i32
    %c0_i32_1 = arith.constant 0 : i32
    return %arg0, %c0_i32, %c0_i32_0 : i32, i32, i32
  }
}

</mosaic_0001>

<bundles_post_ra>
// kernel: tpu_custom_call.1
= control target key start
LH: loop header
LB: loop body
LE: loop exit
PB: predicated region body
PF: predicated region fallthrough
CT: control target
= control target key end

     0   :  { %s814_s0 = inlined_call_operand.hbm [shape: f32[2,32,256], index: 0, kind: input, shape index: {}]   ;;  %s815_s1 = inlined_call_operand.hbm [shape: f32[2,32,256], index: 1, kind: input, shape index: {}]   ;;  %s816_s2 = inlined_call_operand.vmem [shape: f32[2,32,1], index: 2, kind: output, shape index: {}]  }
   0x1   :  { %818 = sst [smem:[#allocation10_spill]] %s814_s0 }
   0x2   :  { %7 = vsyncpa [#allocation4], 0 }
   0x3   :  { %9 = vsyncpa [#allocation4 + $0x1], 0 }
   0x4   :  { %10 = vsyncpa [#allocation6], 0 }
   0x5   :  { %12 = vsyncpa [#allocation6 + $0x1], 0  ;;  %s638_s9 = smov 0   ;;  %s640_s10 = smov 0  }
   0x6   :  { %s642_s11 = smov 0   ;;  %s644_s12 = smov 0  }
   0x7   :  { %s646_s13 = smov 0   ;;  %s648_s14 = smov 0  }
   0x8   :  { %s650_s15 = smov 0   ;;  %s652_s16 = smov 0  }
   0x9 LB: > { %s389_s17 = sadd.s32 4294967295, %s615_s16   ;;  %s27_s18 = sadd.s32 1, %s607_s14  ;;  %s615_s16 = sphi %s652_s16, %s18_s16   ;;  %s611_s15 = sphi %s650_s15, %s832_s15   ;;  %s607_s14 = sphi %s648_s14, %s831_s14   ;;  %s603_s13 = sphi %s646_s13, %s830_s13   ;;  %s599_s12 = sphi %s644_s12, %s829_s12   ;;  %s595_s11 = sphi %s642_s11, %s828_s11   ;;  %s591_s10 = sphi %s640_s10, %s827_s10   ;;  %s587_s9 = sphi %s638_s9, %s826_s9  }
   0xa   : > { %p28_p0 = scmp.ge.s32.totalorder %s27_s18, 2  ;;  %s30_s19 = sadd.s32 1, %s611_s15 }
   0xb   : > { %s39_s20 = sadd.s32 1, %s595_s11  ;;  %p46_p1 = scmp.ne.s32.totalorder %s595_s11, %s591_s10 }
   0xc   : > { %s834_s18 = smov (%p28_p0, %s27_s18), 0  ;;  %s836_s19 = smov (!%p28_p0, %s30_s19), %s611_s15 }
   0xd   : > { %s35_s21 = ssub.s32 %s607_s14, %s834_s18  ;;  %p47_p2 = scmp.eq.s32.totalorder %s615_s16, 0 }
   0xe   : > { %p32_p3 = scmp.ge.s32.totalorder %s836_s19, 2  ;;  %p52_p4 = scmp.ne.s32.totalorder %s591_s10, %s587_s9 }
   0xf   : > { %p689_p5 = por %p47_p2, %p46_p1  ;;  %p53_p6 = scmp.eq.s32.totalorder %s389_s17, 0 }
  0x10   : > { %s838_s19 = smov (%p32_p3, %s836_s19), 0  ;;  %p420_p8 = scmp.lt.s32.totalorder %s615_s16, 4 }
  0x11   : > { %820 = sst [smem:[#allocation9_spill]] %s838_s19  ;;  %p695_p7 = por %p53_p6, %p52_p4 }
  0x12   : > { %s34_s24 = ssub.s32 %s611_s15, %s838_s19  ;;  %s703_s26 = sand.u32 1, %s595_s11  }
  0x13   : > { %s36_s25 = sor.u32 %s35_s21, %s34_s24  ;;  %s393_s27 = sshll.u32 %s703_s26, 5 }
  0x14   : > { %p37_p9 = scmp.eq.s32.totalorder %s36_s25, 0  ;;  %s394_s28 = sshll.u32 %s611_s15, 3 }
  0x15   : > { %s711_s30 = sadd.s32 %s607_s14, %s394_s28  ;;  %s134_s4 = scalar_lea.vmem [#allocation3], %s393_s27 }
  0x16   : > { %s708_s29 = scalar_select %p37_p9, %s595_s11, %s39_s20  }
  0x17   : > { %s395_s3 = sshll.u32 %s711_s30, 7  ;;  %s142_s5 = sshll.u32 %s134_s4, 4  ;;  %s143_s5 = int_to_ptr.vmem [resolvable:$true] %s142_s5 }
  0x18   : > { %s822_s0 = sld [smem:[#allocation10_spill]]  ;;  %p725_p10 = pnand %p420_p8, %p689_p5 }
  0x19   : > { %p399_p11 = scmp.ge.s32.totalorder %s615_s16, 1  ;;  %s131_s17 = scalar_lea.sflag [#allocation4], %s703_s26 }
  0x1a   : > { %p491_p12 = pneg %p725_p10  ;;  %s502_s20 = scalar_lea.vmem %s143_s5, 512 }
  0x1b   : > { %p503_p13 = scmp.ne.s32.totalorder %s143_s5, %s502_s20  ;;  %s617_s21 = smov [#allocation3]  }
  0x1c   : > { %s507_s24 = sshll.u32 %s617_s21, 4  ;;  %s508_s24 = int_to_ptr.vmem [resolvable:$false] %s507_s24 }
  0x1d   : > { %p505_p0 = pnand %p503_p13, %p491_p12  ;;  %s509_s22 = scalar_lea.vmem %s508_s24, 1024 }
  0x1e   : > { %s141_s8 = scalar_lea.hbm %s822_s0, %s395_s3  ;;  %p510_p2 = scmp.lt.s32.totalorder %s143_s5, %s508_s24 }
  0x1f   : > { %p506_p1 = pneg %p505_p0  ;;  %p511_p3 = scmp.lt.s32.totalorder %s509_s22, %s502_s20 }
  0x21   : > { %p512_p4 = por %p511_p3, %p510_p2 }
  0x23   : > { %p513_p5 = pnand %p512_p4, %p506_p1 }
  0x25   : > { %516 = shalt.err (!%p513_p5)
}
  0x26   : > { %s618_s25 = smov 256   ;;  %s619_s28 = smov 128  }
  0x27   : > { %s620_s4 = smov 8   ;;  %p172_p6 = scmp.lt.s32.totalorder %s615_s16, 5 }
  0x28   : > { %416 = dma.hbm_to_vmem [thread:$0]  (!%p725_p10), %s141_s8, 512, %s143_s5, %s131_s17, %s618_s25, %s619_s28, %s620_s4  }
  0x29   : > { %s163_s20 = scalar_lea.hbm %s815_s1, %s395_s3  ;;  %p746_p8 = pnand %p399_p11, %p172_p6 }
  0x2a   : > { %s156_s24 = scalar_lea.vmem [#allocation5], %s393_s27  ;;  %s153_s0 = scalar_lea.sflag [#allocation6], %s703_s26 }
  0x2b   : > { %s164_s22 = sshll.u32 %s156_s24, 4  ;;  %s621_s30 = smov [#allocation5]   ;;  %s165_s22 = int_to_ptr.vmem [resolvable:$true] %s164_s22 }
  0x2c   : > { %s530_s19 = scalar_lea.vmem %s165_s22, 512  ;;  %s535_s5 = sshll.u32 %s621_s30, 4  ;;  %s536_s5 = int_to_ptr.vmem [resolvable:$false] %s535_s5 }
  0x2d   : > { %p531_p9 = scmp.ne.s32.totalorder %s165_s22, %s530_s19  ;;  %s537_s3 = scalar_lea.vmem %s536_s5, 1024 }
  0x2e   : > { %p538_p1 = scmp.lt.s32.totalorder %s165_s22, %s536_s5  ;;  %p539_p11 = scmp.lt.s32.totalorder %s537_s3, %s530_s19 }
  0x2f   : > { %p533_p13 = pnand %p531_p9, %p491_p12 }
  0x30   : > { %p540_p2 = por %p539_p11, %p538_p1 }
  0x31   : > { %p534_p0 = pneg %p533_p13 }
  0x33   : > { %p541_p3 = pnand %p540_p2, %p534_p0 }
  0x35   : > { %544 = shalt.err (!%p541_p3)
}
  0x36   : > { %419 = dma.hbm_to_vmem [thread:$0]  (!%p725_p10), %s163_s20, 512, %s165_s22, %s153_s0, %s618_s25, %s619_s28, %s620_s4  }
  0x37   : > { %176 = sbr.rel (%p746_p8) target bundleno = 237 (0xed), region = 28  ;;  %s178_s26 = sand.u32 (!%p746_p8), 1, %s591_s10  }
  0x38   : > { %s400_s27 = sshll.u32 (!%p746_p8), %s178_s26, 5  ;;  %s179_s8 = scalar_lea.sflag (!%p746_p8), [#allocation4], %s178_s26 }
  0x39   : > { %s182_s17 = scalar_lea.vmem (!%p746_p8), [#allocation3], %s400_s27 }
  0x3c   : > { %578 = dma.done.wait (%p695_p7), %s179_s8, 512  }
  0x3d   : > { %580 = vsyncadd (%p695_p7), %s179_s8, 4294966784  ;;  %s188_s19 = scalar_lea.sflag [#allocation6], %s178_s26  ;;  %s191_s6 = scalar_lea.vmem [#allocation5], %s400_s27 }
  0x3e   : > { %582 = dma.done.wait (%p695_p7), %s188_s19, 512  }
  0x3f   : > { %584 = vsyncadd (%p695_p7), %s188_s19, 4294966784  ;;  %p217_p10 = scmp.lt.s32.totalorder %s603_s13, 1  ;;  %p404_p12 = scmp.ne.s32.totalorder %s599_s12, 0 }
  0x41   : > { %s840_s13 = smov (!%p217_p10, %s603_s13), 1  ;;  %225 = sbr.rel (%p404_p12) target bundleno = 73 (0x49), region = 40 }
  0x42   : > { %s408_s0 = sshll.u32 %s840_s13, 5 }
  0x43   : > { %s774_s28 = scalar_lea.vmem %s816_s2, %s408_s0 }
  0x46   : > { %vm226_vm0 = vcmask 7168   ;;  %v622_v0 = vmov 0.0  }
  0x47   : > { %227 = vst.msk [vmem:[#allocation2] sm:$0xff] %vm226_vm0, %v622_v0  ;;  %228 = vst.msk [vmem:[#allocation2 + $0x8] sm:$0xff] %vm226_vm0, %v622_v0 }
  0x48   : > { %229 = vst.msk [vmem:[#allocation2 + $0x10] sm:$0xff] %vm226_vm0, %v622_v0  ;;  %230 = vst.msk [vmem:[#allocation2 + $0x18] sm:$0xff] %vm226_vm0, %v622_v0 }
  0x49 PF: > { %v233_v1 = vld [vmem:[%s182_s17 + $0x10] sm:$0xff]  ;;  %v231_v2 = vld [vmem:[%s182_s17] sm:$0xff]  ;;  %v234_v3 = vld [vmem:[%s182_s17 + $0x18] sm:$0xff]  ;;  %vm267_vm1 = vcmask 7168   ;;  %p405_p7 = scmp.ne.s32.totalorder %s599_s12, 1 }
  0x4a   : > { %247 = vadd.xlane.f32.xlu1 %v233_v1  ;;  %243 = vadd.xlane.f32.xlu0 %v231_v2  ;;  %v232_v4 = vld [vmem:[%s182_s17 + $0x8] sm:$0xff]  ;;  %v235_v6 = vld [vmem:[%s191_s6] sm:$0xff]  ;;  %v238_v7 = vld [vmem:[%s191_s6 + $0x18] sm:$0xff] }
  0x4b   : > { %v236_v5 = vld [vmem:[%s191_s6 + $0x8] sm:$0xff]  ;;  %v237_v8 = vld [vmem:[%s191_s6 + $0x10] sm:$0xff] }
  0x4e   : > { %249 = vadd.xlane.f32.xlu1 %v234_v3  ;;  %245 = vadd.xlane.f32.xlu0 %v232_v4  ;;  %v240_v13 = vld [vmem:[#allocation2 + $0x8] sm:$0xff]  ;;  %v239_v15 = vld [vmem:[#allocation2] sm:$0xff] }
  0x4f   : > { %v242_v21 = vld [vmem:[#allocation2 + $0x18] sm:$0xff]  ;;  %v241_v23 = vld [vmem:[#allocation2 + $0x10] sm:$0xff] }
  0x52   : > { %253 = vadd.xlane.f32.xlu1 %v236_v5  ;;  %251 = vadd.xlane.f32.xlu0 %v235_v6 }
  0x56   : > { %257 = vadd.xlane.f32.xlu1 %v238_v7  ;;  %255 = vadd.xlane.f32.xlu0 %v237_v8 }
  0xd3   : > { %v248_v9 = vpop.xlane.xlu1 %247  ;;  %v244_v10 = vpop.xlane.xlu0 %243 }
  0xd7   : > { %v250_v11 = vpop.xlane.xlu1 %249  ;;  %v246_v12 = vpop.xlane.xlu0 %245 }
  0xdb   : > { %v254_v14 = vpop.xlane.xlu1 %253  ;;  %v252_v16 = vpop.xlane.xlu0 %251 }
  0xdc   : > { %v260_v17 = vadd.f32 %v254_v14, %v246_v12  ;;  %v259_v18 = vadd.f32 %v252_v16, %v244_v10 }
  0xde   : > { %v264_v19 = vadd.f32 %v260_v17, %v240_v13  ;;  %v263_v20 = vadd.f32 %v259_v18, %v239_v15 }
  0xdf   : > { %v258_v22 = vpop.xlane.xlu1 %257  ;;  %v256_v24 = vpop.xlane.xlu0 %255 }
  0xe0   : > { %269 = vst.msk [vmem:[#allocation2 + $0x8] sm:$0xff] %vm267_vm1, %v264_v19  ;;  %268 = vst.msk [vmem:[#allocation2] sm:$0xff] %vm267_vm1, %v263_v20  ;;  %v262_v25 = vadd.f32 %v258_v22, %v250_v11  ;;  %v261_v26 = vadd.f32 %v256_v24, %v248_v9  ;;  %275 = sbr.rel (%p405_p7) target bundleno = 237 (0xed), region = 44 }
  0xe2   : > { %v266_v27 = vadd.f32 %v262_v25, %v242_v21  ;;  %v265_v28 = vadd.f32 %v261_v26, %v241_v23 }
  0xe4   : > { %271 = vst.msk [vmem:[#allocation2 + $0x18] sm:$0xff] %vm267_vm1, %v266_v27  ;;  %270 = vst.msk [vmem:[#allocation2 + $0x10] sm:$0xff] %vm267_vm1, %v265_v28 }
  0xe7   : > { %v276_v29 = vld [vmem:[#allocation2] sm:$0xff]  ;;  %v277_v30 = vld [vmem:[#allocation2 + $0x8] sm:$0xff] }
  0xe8   : > { %280 = vst.msk [vmem:[%s774_s28] sm:$0xff] %vm267_vm1, %v276_v29  ;;  %281 = vst.msk [vmem:[%s774_s28 + $0x8] sm:$0xff] %vm267_vm1, %v277_v30 }
  0xeb   : > { %v278_v31 = vld [vmem:[#allocation2 + $0x10] sm:$0xff]  ;;  %v279_v32 = vld [vmem:[#allocation2 + $0x18] sm:$0xff] }
  0xec   : > { %282 = vst.msk [vmem:[%s774_s28 + $0x10] sm:$0xff] %vm267_vm1, %v278_v31  ;;  %283 = vst.msk [vmem:[%s774_s28 + $0x18] sm:$0xff] %vm267_vm1, %v279_v32 }
  0xed PF: > { %s18_s16 = sadd.s32 1, %s615_s16   ;;  %s825_s23 = sld [smem:[#allocation9_spill]] }
  0xee   : > { %p15_p4 = scmp.ge.s32.totalorder %s18_s16, 6   ;;  %s826_s9 = smov %s591_s10 }
  0xef   : > { %s827_s10 = smov %s595_s11  ;;  %s828_s11 = smov %s708_s29 }
  0xf0   : > { %s829_s12 = smov %s607_s14  ;;  %s830_s13 = smov %s611_s15 }
  0xf1   : > { %s831_s14 = smov %s834_s18  ;;  %17 = sbr.rel (!%p15_p4) target bundleno = 9 (0x9), region = 89 }
  0xf3   : > { %s832_s15 = smov %s825_s23 }
  0xf6   :  { %305 = vsyncpa [#allocation4], 1 }
  0xf7   :  { %307 = vsyncpa [#allocation4 + $0x1], 1 }
  0xf8   :  { %308 = vsyncpa [#allocation6], 1 }
  0xf9   :  { %310 = vsyncpa [#allocation6 + $0x1], 1 }

</bundles_post_ra>
